<compile_context>
chip_gen: v7x
topology: tpu7x:2x2x1
jax: 0.10.0
libtpu: 0.0.40
codegen_flags: <defaults>
</compile_context>

<pallas_src>
import functools

import jax
import jax.numpy as jnp
from jax import lax
from jax.experimental import pallas as pl
from jax.experimental.pallas import tpu as pltpu

EPS = 1e-5  # torch.nn.GroupNorm default eps


def _gelu(x):
    # torch.nn.GELU() / F.gelu default: exact (erf-based) GELU
    return 0.5 * x * (1.0 + lax.erf(x / jnp.sqrt(2.0).astype(x.dtype)))


def _group_norm1(x, gamma_row, beta_row):
    """GroupNorm(num_groups=1) for one sample, fused single-pass statistics.

    x: (H, W*C) f32; gamma_row / beta_row: (1, W*C) = per-channel params tiled W times.
    """
    n = x.size
    s = jnp.sum(x)
    ss = jnp.sum(x * x)
    mean = s / n
    var = ss / n - mean * mean          # biased variance (matches PyTorch)
    inv = lax.rsqrt(var + EPS)
    return (x - mean) * inv * gamma_row + beta_row


def double_conv_kernel(x_ref, w1_ref, w2_ref, g1_ref, b1_ref, g2_ref, b2_ref,
                       o_ref, xrows_ref, hrows_ref, *, H, residual):
    """One batch element per grid step.

    x_ref   : (1, H, W*Cin)          f32, lane-dense NHWC rows
    w1_ref  : (3, W*Cin,  W*Cmid)    bf16 banded conv1 weights
    w2_ref  : (3, W*Cmid, W*Cout)    bf16 banded conv2 weights
    g*/b*   : (1, W*C)               f32, per-channel affine tiled along W
    o_ref   : (1, H, W*Cout)
    xrows_ref: (H+2, W*Cin)  f32 VMEM scratch (row-padded input)
    hrows_ref: (H+2, W*Cmid) f32 VMEM scratch (row-padded intermediate)
    """
    lin = x_ref.shape[-1]      # W * Cin
    lmid = w1_ref.shape[-1]    # W * Cmid
    lout = w2_ref.shape[-1]    # W * Cout

    x = x_ref[0]                                        # (H, W*Cin) f32

    # ---- stage row-padded input; only the two halo rows are zeroed ----
    zin = jnp.zeros((1, lin), jnp.float32)
    xrows_ref[0:1, :] = zin
    xrows_ref[H + 1:H + 2, :] = zin
    xrows_ref[1:H + 1, :] = x

    # ---- conv1: 3 banded bf16 MXU matmuls, f32 accumulation ----
    acc1 = jnp.zeros((H, lmid), jnp.float32)
    for dy in range(3):
        lhs = xrows_ref[dy:dy + H, :].astype(jnp.bfloat16)
        acc1 = acc1 + jnp.dot(lhs, w1_ref[dy], preferred_element_type=jnp.float32)

    h = _gelu(_group_norm1(acc1, g1_ref[...], b1_ref[...]))

    # ---- stage row-padded intermediate (lane-dense store, halo rows zeroed) ----
    zmid = jnp.zeros((1, lmid), jnp.float32)
    hrows_ref[0:1, :] = zmid
    hrows_ref[H + 1:H + 2, :] = zmid
    hrows_ref[1:H + 1, :] = h

    # ---- conv2 ----
    acc2 = jnp.zeros((H, lout), jnp.float32)
    for dy in range(3):
        lhs = hrows_ref[dy:dy + H, :].astype(jnp.bfloat16)
        acc2 = acc2 + jnp.dot(lhs, w2_ref[dy], preferred_element_type=jnp.float32)

    out = _group_norm1(acc2, g2_ref[...], b2_ref[...])

    if residual:
        out = _gelu(x + out)            # valid only for Cin == Cout (module's usage)

    o_ref[0] = out.astype(o_ref.dtype)  # unmasked, lane-dense (H, W*Cout) store


def _banded_weight(k_hwio, W):
    """(3, 3, Cin, Cout) HWIO -> (3, W*Cin, W*Cout) banded matrices.

    B[dy][wp*Cin + ci, w*Cout + co] = k[dy, dx, ci, co] with wp = w + dx - 1 when
    0 <= wp < W (SAME zero-padding along W is baked into the band).
    """
    KH, KW, Cin, Cout = k_hwio.shape
    w_idx = jnp.arange(W)
    out = jnp.zeros((KH, W * Cin, W * Cout), k_hwio.dtype)
    for dx in range(KW):
        wp = w_idx + dx - (KW // 2)                     # input column for output col w
        sel = (jnp.arange(W)[:, None] == wp[None, :]).astype(k_hwio.dtype)   # (Wp, W)
        part = jnp.einsum('pw,yio->ypiwo', sel, k_hwio[:, dx])
        out = out + part.reshape(KH, W * Cin, W * Cout)
    return out


def double_conv(x_nchw, w1_hwio, w2_hwio, g1, b1, g2, b2, *, residual=False):
    """x_nchw: (N, Cin, H, W) float32 (PyTorch layout). Returns (N, Cout, H, W)."""
    N, Cin, H, W = x_nchw.shape
    Cmid = w1_hwio.shape[-1]
    Cout = w2_hwio.shape[-1]
    assert w2_hwio.shape[2] == Cmid
    if residual:
        assert Cin == Cout

    # NCHW -> NHWC -> lane-dense rows (N, H, W*Cin); no jnp.pad (handled in-kernel).
    x = jnp.transpose(x_nchw, (0, 2, 3, 1)).reshape(N, H, W * Cin)

    # Banded weights with built-in SAME padding, cast to bf16 for the MXU.
    w1b = _banded_weight(w1_hwio, W).astype(jnp.bfloat16)    # (3, W*Cin,  W*Cmid)
    w2b = _banded_weight(w2_hwio, W).astype(jnp.bfloat16)    # (3, W*Cmid, W*Cout)

    # Per-channel affine params tiled along W so they broadcast over (H, W*C) lanes.
    g1r = jnp.tile(g1, W).reshape(1, W * Cmid).astype(jnp.float32)
    b1r = jnp.tile(b1, W).reshape(1, W * Cmid).astype(jnp.float32)
    g2r = jnp.tile(g2, W).reshape(1, W * Cout).astype(jnp.float32)
    b2r = jnp.tile(b2, W).reshape(1, W * Cout).astype(jnp.float32)

    kernel = functools.partial(double_conv_kernel, H=H, residual=residual)

    out = pl.pallas_call(
        kernel,
        out_shape=jax.ShapeDtypeStruct((N, H, W * Cout), jnp.float32),
        grid_spec=pltpu.PrefetchScalarGridSpec(
            num_scalar_prefetch=0,
            grid=(N,),
            in_specs=[
                pl.BlockSpec((1, H, W * Cin), lambda n: (n, 0, 0)),
                pl.BlockSpec((3, W * Cin, W * Cmid), lambda n: (0, 0, 0)),
                pl.BlockSpec((3, W * Cmid, W * Cout), lambda n: (0, 0, 0)),
                pl.BlockSpec((1, W * Cmid), lambda n: (0, 0)),
                pl.BlockSpec((1, W * Cmid), lambda n: (0, 0)),
                pl.BlockSpec((1, W * Cout), lambda n: (0, 0)),
                pl.BlockSpec((1, W * Cout), lambda n: (0, 0)),
            ],
            out_specs=pl.BlockSpec((1, H, W * Cout), lambda n: (n, 0, 0)),
            scratch_shapes=[
                pltpu.VMEM((H + 2, W * Cin), jnp.float32),
                pltpu.VMEM((H + 2, W * Cmid), jnp.float32),
            ],
        ),
        compiler_params=pltpu.CompilerParams(
            dimension_semantics=("parallel",),        # batch is independent -> 2 TCs on v7x
            vmem_limit_bytes=32 * 1024 * 1024,
        ),
    )(x, w1b, w2b, g1r, b1r, g2r, b2r)

    # (N, H, W*Cout) -> (N, Cout, H, W); the reshape is free (contiguous).
    return jnp.transpose(out.reshape(N, H, W, Cout), (0, 3, 1, 2))


# ---------------- pure-JAX reference (for correctness check) ----------------
def ref_double_conv(x_nchw, w1, w2, g1, b1, g2, b2, *, residual=False):
    x = jnp.transpose(x_nchw, (0, 2, 3, 1))

    def conv(x, w):
        return lax.conv_general_dilated(
            x, w, window_strides=(1, 1), padding=((1, 1), (1, 1)),
            dimension_numbers=("NHWC", "HWIO", "NHWC"))

    def gn(x, g, b):
        mean = jnp.mean(x, axis=(1, 2, 3), keepdims=True)
        var = jnp.mean((x - mean) ** 2, axis=(1, 2, 3), keepdims=True)
        return (x - mean) / jnp.sqrt(var + EPS) * g + b

    def gelu(x):
        return 0.5 * x * (1.0 + lax.erf(x / jnp.sqrt(2.0)))

    h = gelu(gn(conv(x, w1), g1, b1))
    h = gn(conv(h, w2), g2, b2)
    if residual:
        h = gelu(x + h)
    return jnp.transpose(h, (0, 3, 1, 2))


def _make_params(key, cin, cmid, cout):
    k1, k2, k3, k4, k5, k6 = jax.random.split(key, 6)
    w1 = jax.random.normal(k1, (3, 3, cin, cmid), jnp.float32) * 0.1
    w2 = jax.random.normal(k2, (3, 3, cmid, cout), jnp.float32) * 0.1
    g1 = 1.0 + 0.1 * jax.random.normal(k3, (cmid,), jnp.float32)
    b1 = 0.1 * jax.random.normal(k4, (cmid,), jnp.float32)
    g2 = 1.0 + 0.1 * jax.random.normal(k5, (cout,), jnp.float32)
    b2 = 0.1 * jax.random.normal(k6, (cout,), jnp.float32)
    return w1, w2, g1, b1, g2, b2


if __name__ == "__main__":
    key = jax.random.PRNGKey(0)
    kx, kp, kx2, kp2 = jax.random.split(key, 4)

    double_conv_jit = jax.jit(double_conv, static_argnames=("residual",))

    # Case 1: DoubleConv(in=4, out=8), residual=False  (mid_channels defaults to out)
    N, Cin, H, W = 2, 4, 16, 16
    Cout = 8
    Cmid = Cout
    x = jax.random.normal(kx, (N, Cin, H, W), jnp.float32)
    params = _make_params(kp, Cin, Cmid, Cout)

    out = jax.block_until_ready(double_conv_jit(x, *params, residual=False))
    ref = ref_double_conv(x, *params, residual=False)
    assert out.shape == (N, Cout, H, W)
    # bf16 matmul operands (f32 accumulation / GN stats) -> relaxed tolerance vs f32 ref.
    assert jnp.allclose(out, ref, atol=1e-1, rtol=1e-1), "residual=False mismatch"
    assert float(jnp.mean(jnp.abs(out - ref))) < 3e-2, "residual=False mean-error too large"

    # Case 2: DoubleConv(in=8, out=8, residual=True)
    C = 8
    x2 = jax.random.normal(kx2, (N, C, H, W), jnp.float32)
    params2 = _make_params(kp2, C, C, C)

    out2 = jax.block_until_ready(double_conv_jit(x2, *params2, residual=True))
    ref2 = ref_double_conv(x2, *params2, residual=True)
    assert out2.shape == (N, C, H, W)
    assert jnp.allclose(out2, ref2, atol=1e-1, rtol=1e-1), "residual=True mismatch"
    assert float(jnp.mean(jnp.abs(out2 - ref2))) < 3e-2, "residual=True mean-error too large"

    print("KERNEL_OK")
</pallas_src>

<mosaic_0001>
module attributes {stable_mosaic.version = 11 : i64} {
  func.func @double_conv_kernel(%arg0: i32, %arg1: memref<1x16x64xf32, #tpu.memory_space<vmem>>, %arg2: memref<3x64x128xbf16, #tpu.memory_space<vmem>>, %arg3: memref<3x128x128xbf16, #tpu.memory_space<vmem>>, %arg4: memref<1x128xf32, #tpu.memory_space<vmem>>, %arg5: memref<1x128xf32, #tpu.memory_space<vmem>>, %arg6: memref<1x128xf32, #tpu.memory_space<vmem>>, %arg7: memref<1x128xf32, #tpu.memory_space<vmem>>, %arg8: memref<1x16x128xf32, #tpu.memory_space<vmem>>, %arg9: memref<18x64xf32, #tpu.memory_space<vmem>>, %arg10: memref<18x128xf32, #tpu.memory_space<vmem>>) attributes {dimension_semantics = [#tpu.dimension_semantics<parallel>], iteration_bounds = array<i64: 2>, scalar_prefetch = 0 : i64, scratch_operands = 2 : i64, tpu.core_type = #tpu.core_type<tc>, window_params = [{transform_indices = @transform_0, window_bounds = array<i64: 1, 16, 64>}, {pipeline_mode = #tpu.pipeline_mode<synchronous>, transform_indices = @transform_1, window_bounds = array<i64: 3, 64, 128>}, {pipeline_mode = #tpu.pipeline_mode<synchronous>, transform_indices = @transform_2, window_bounds = array<i64: 3, 128, 128>}, {pipeline_mode = #tpu.pipeline_mode<synchronous>, transform_indices = @transform_3, window_bounds = array<i64: 1, 128>}, {pipeline_mode = #tpu.pipeline_mode<synchronous>, transform_indices = @transform_4, window_bounds = array<i64: 1, 128>}, {pipeline_mode = #tpu.pipeline_mode<synchronous>, transform_indices = @transform_5, window_bounds = array<i64: 1, 128>}, {pipeline_mode = #tpu.pipeline_mode<synchronous>, transform_indices = @transform_6, window_bounds = array<i64: 1, 128>}, {transform_indices = @transform_7, window_bounds = array<i64: 1, 16, 128>}]} {
    %c0 = arith.constant 0 : index
    %c0_0 = arith.constant 0 : index
    %c0_1 = arith.constant 0 : index
    %0 = vector.load %arg1[%c0, %c0_0, %c0_1] : memref<1x16x64xf32, #tpu.memory_space<vmem>>, vector<1x16x64xf32>
    %1 = vector.shape_cast %0 : vector<1x16x64xf32> to vector<16x64xf32>
    %cst = arith.constant 0.000000e+00 : f32
    %2 = vector.broadcast %cst : f32 to vector<1x64xf32>
    %c0_2 = arith.constant 0 : index
    %c0_3 = arith.constant 0 : index
    %3 = vector.load %arg9[%c0_2, %c0_3] : memref<18x64xf32, #tpu.memory_space<vmem>>, vector<1x64xf32>
    tpu.vector_store %arg9[%c0_2, %c0_3], %2 {strides = array<i32>} : memref<18x64xf32, #tpu.memory_space<vmem>>, vector<1x64xf32>,
    %c17 = arith.constant 17 : index
    %c0_4 = arith.constant 0 : index
    %4 = vector.load %arg9[%c17, %c0_4] : memref<18x64xf32, #tpu.memory_space<vmem>>, vector<1x64xf32>
    tpu.vector_store %arg9[%c17, %c0_4], %2 {strides = array<i32>} : memref<18x64xf32, #tpu.memory_space<vmem>>, vector<1x64xf32>,
    %c1 = arith.constant 1 : index
    %c0_5 = arith.constant 0 : index
    %5 = vector.load %arg9[%c1, %c0_5] : memref<18x64xf32, #tpu.memory_space<vmem>>, vector<16x64xf32>
    tpu.vector_store %arg9[%c1, %c0_5], %1 {strides = array<i32>} : memref<18x64xf32, #tpu.memory_space<vmem>>, vector<16x64xf32>,
    %cst_6 = arith.constant 0.000000e+00 : f32
    %6 = vector.broadcast %cst_6 : f32 to vector<16x128xf32>
    %c0_7 = arith.constant 0 : index
    %c0_8 = arith.constant 0 : index
    %7 = vector.load %arg9[%c0_7, %c0_8] : memref<18x64xf32, #tpu.memory_space<vmem>>, vector<16x64xf32>
    %8 = arith.truncf %7 : vector<16x64xf32> to vector<16x64xbf16>
    %c0_9 = arith.constant 0 : index
    %c0_10 = arith.constant 0 : index
    %c0_11 = arith.constant 0 : index
    %9 = vector.load %arg2[%c0_9, %c0_10, %c0_11] : memref<3x64x128xbf16, #tpu.memory_space<vmem>>, vector<1x64x128xbf16>
    %10 = vector.shape_cast %9 : vector<1x64x128xbf16> to vector<64x128xbf16>
    %cst_12 = arith.constant dense<0.000000e+00> : vector<16x128xf32>
    %11 = tpu.matmul %8, %10, %cst_12 {dimension_numbers = #tpu.dot_dimension_numbers<[1], [0], [0], [1], [0, 0, 1, 1], [], []>} : vector<16x64xbf16>, vector<64x128xbf16>, vector<16x128xf32> -> vector<16x128xf32>
    %12 = arith.addf %6, %11 : vector<16x128xf32>
    %c1_13 = arith.constant 1 : index
    %c0_14 = arith.constant 0 : index
    %13 = vector.load %arg9[%c1_13, %c0_14] : memref<18x64xf32, #tpu.memory_space<vmem>>, vector<16x64xf32>
    %14 = arith.truncf %13 : vector<16x64xf32> to vector<16x64xbf16>
    %c1_15 = arith.constant 1 : index
    %c0_16 = arith.constant 0 : index
    %c0_17 = arith.constant 0 : index
    %15 = vector.load %arg2[%c1_15, %c0_16, %c0_17] : memref<3x64x128xbf16, #tpu.memory_space<vmem>>, vector<1x64x128xbf16>
    %16 = vector.shape_cast %15 : vector<1x64x128xbf16> to vector<64x128xbf16>
    %cst_18 = arith.constant dense<0.000000e+00> : vector<16x128xf32>
    %17 = tpu.matmul %14, %16, %cst_18 {dimension_numbers = #tpu.dot_dimension_numbers<[1], [0], [0], [1], [0, 0, 1, 1], [], []>} : vector<16x64xbf16>, vector<64x128xbf16>, vector<16x128xf32> -> vector<16x128xf32>
    %18 = arith.addf %12, %17 : vector<16x128xf32>
    %c2 = arith.constant 2 : index
    %c0_19 = arith.constant 0 : index
    %19 = vector.load %arg9[%c2, %c0_19] : memref<18x64xf32, #tpu.memory_space<vmem>>, vector<16x64xf32>
    %20 = arith.truncf %19 : vector<16x64xf32> to vector<16x64xbf16>
    %c2_20 = arith.constant 2 : index
    %c0_21 = arith.constant 0 : index
    %c0_22 = arith.constant 0 : index
    %21 = vector.load %arg2[%c2_20, %c0_21, %c0_22] : memref<3x64x128xbf16, #tpu.memory_space<vmem>>, vector<1x64x128xbf16>
    %22 = vector.shape_cast %21 : vector<1x64x128xbf16> to vector<64x128xbf16>
    %cst_23 = arith.constant dense<0.000000e+00> : vector<16x128xf32>
    %23 = tpu.matmul %20, %22, %cst_23 {dimension_numbers = #tpu.dot_dimension_numbers<[1], [0], [0], [1], [0, 0, 1, 1], [], []>} : vector<16x64xbf16>, vector<64x128xbf16>, vector<16x128xf32> -> vector<16x128xf32>
    %24 = arith.addf %18, %23 : vector<16x128xf32>
    %c0_24 = arith.constant 0 : index
    %c0_25 = arith.constant 0 : index
    %25 = vector.load %arg4[%c0_24, %c0_25] : memref<1x128xf32, #tpu.memory_space<vmem>>, vector<1x128xf32>
    %c0_26 = arith.constant 0 : index
    %c0_27 = arith.constant 0 : index
    %26 = vector.load %arg5[%c0_26, %c0_27] : memref<1x128xf32, #tpu.memory_space<vmem>>, vector<1x128xf32>
    %27 = vector.shape_cast %24 : vector<16x128xf32> to vector<1x16x128xf32>
    %cst_28 = arith.constant dense<0.000000e+00> : vector<1xf32>
    %28 = vector.multi_reduction <add>, %27, %cst_28 [1, 2] : vector<1x16x128xf32> to vector<1xf32>
    %29 = vector.shape_cast %28 : vector<1xf32> to vector<1x1x1xf32>
    %30 = vector.extract %29[0, 0, 0] : f32 from vector<1x1x1xf32>
    %31 = arith.mulf %24, %24 : vector<16x128xf32>
    %32 = vector.shape_cast %31 : vector<16x128xf32> to vector<1x16x128xf32>
    %cst_29 = arith.constant dense<0.000000e+00> : vector<1xf32>
    %33 = vector.multi_reduction <add>, %32, %cst_29 [1, 2] : vector<1x16x128xf32> to vector<1xf32>
    %34 = vector.shape_cast %33 : vector<1xf32> to vector<1x1x1xf32>
    %35 = vector.extract %34[0, 0, 0] : f32 from vector<1x1x1xf32>
    %cst_30 = arith.constant 2.048000e+03 : f32
    %36 = arith.divf %30, %cst_30 : f32
    %cst_31 = arith.constant 2.048000e+03 : f32
    %37 = arith.divf %35, %cst_31 : f32
    %38 = arith.mulf %36, %36 : f32
    %39 = arith.subf %37, %38 : f32
    %cst_32 = arith.constant 9.99999974E-6 : f32
    %40 = arith.addf %39, %cst_32 : f32
    %41 = math.rsqrt %40 : f32
    %42 = vector.broadcast %36 : f32 to vector<16x128xf32>
    %43 = arith.subf %24, %42 : vector<16x128xf32>
    %44 = vector.broadcast %41 : f32 to vector<16x128xf32>
    %45 = arith.mulf %43, %44 : vector<16x128xf32>
    %46 = vector.broadcast %25 : vector<1x128xf32> to vector<16x128xf32>
    %47 = arith.mulf %45, %46 : vector<16x128xf32>
    %48 = vector.broadcast %26 : vector<1x128xf32> to vector<16x128xf32>
    %49 = arith.addf %47, %48 : vector<16x128xf32>
    %cst_33 = arith.constant 5.000000e-01 : f32
    %50 = vector.broadcast %cst_33 : f32 to vector<16x128xf32>
    %51 = arith.mulf %50, %49 : vector<16x128xf32>
    %cst_34 = arith.constant 2.000000e+00 : f32
    %52 = math.sqrt %cst_34 : f32
    %53 = vector.broadcast %52 : f32 to vector<16x128xf32>
    %54 = arith.divf %49, %53 : vector<16x128xf32>
    %55 = math.erf %54 : vector<16x128xf32>
    %cst_35 = arith.constant 1.000000e+00 : f32
    %56 = vector.broadcast %cst_35 : f32 to vector<16x128xf32>
    %57 = arith.addf %56, %55 : vector<16x128xf32>
    %58 = arith.mulf %51, %57 : vector<16x128xf32>
    %cst_36 = arith.constant 0.000000e+00 : f32
    %59 = vector.broadcast %cst_36 : f32 to vector<1x128xf32>
    %c0_37 = arith.constant 0 : index
    %c0_38 = arith.constant 0 : index
    %60 = vector.load %arg10[%c0_37, %c0_38] : memref<18x128xf32, #tpu.memory_space<vmem>>, vector<1x128xf32>
    tpu.vector_store %arg10[%c0_37, %c0_38], %59 {strides = array<i32>} : memref<18x128xf32, #tpu.memory_space<vmem>>, vector<1x128xf32>,
    %c17_39 = arith.constant 17 : index
    %c0_40 = arith.constant 0 : index
    %61 = vector.load %arg10[%c17_39, %c0_40] : memref<18x128xf32, #tpu.memory_space<vmem>>, vector<1x128xf32>
    tpu.vector_store %arg10[%c17_39, %c0_40], %59 {strides = array<i32>} : memref<18x128xf32, #tpu.memory_space<vmem>>, vector<1x128xf32>,
    %c1_41 = arith.constant 1 : index
    %c0_42 = arith.constant 0 : index
    %62 = vector.load %arg10[%c1_41, %c0_42] : memref<18x128xf32, #tpu.memory_space<vmem>>, vector<16x128xf32>
    tpu.vector_store %arg10[%c1_41, %c0_42], %58 {strides = array<i32>} : memref<18x128xf32, #tpu.memory_space<vmem>>, vector<16x128xf32>,
    %cst_43 = arith.constant 0.000000e+00 : f32
    %63 = vector.broadcast %cst_43 : f32 to vector<16x128xf32>
    %c0_44 = arith.constant 0 : index
    %c0_45 = arith.constant 0 : index
    %64 = vector.load %arg10[%c0_44, %c0_45] : memref<18x128xf32, #tpu.memory_space<vmem>>, vector<16x128xf32>
    %65 = arith.truncf %64 : vector<16x128xf32> to vector<16x128xbf16>
    %c0_46 = arith.constant 0 : index
    %c0_47 = arith.constant 0 : index
    %c0_48 = arith.constant 0 : index
    %66 = vector.load %arg3[%c0_46, %c0_47, %c0_48] : memref<3x128x128xbf16, #tpu.memory_space<vmem>>, vector<1x128x128xbf16>
    %67 = vector.shape_cast %66 : vector<1x128x128xbf16> to vector<128x128xbf16>
    %cst_49 = arith.constant dense<0.000000e+00> : vector<16x128xf32>
    %68 = tpu.matmul %65, %67, %cst_49 {dimension_numbers = #tpu.dot_dimension_numbers<[1], [0], [0], [1], [0, 0, 1, 1], [], []>} : vector<16x128xbf16>, vector<128x128xbf16>, vector<16x128xf32> -> vector<16x128xf32>
    %69 = arith.addf %63, %68 : vector<16x128xf32>
    %c1_50 = arith.constant 1 : index
    %c0_51 = arith.constant 0 : index
    %70 = vector.load %arg10[%c1_50, %c0_51] : memref<18x128xf32, #tpu.memory_space<vmem>>, vector<16x128xf32>
    %71 = arith.truncf %70 : vector<16x128xf32> to vector<16x128xbf16>
    %c1_52 = arith.constant 1 : index
    %c0_53 = arith.constant 0 : index
    %c0_54 = arith.constant 0 : index
    %72 = vector.load %arg3[%c1_52, %c0_53, %c0_54] : memref<3x128x128xbf16, #tpu.memory_space<vmem>>, vector<1x128x128xbf16>
    %73 = vector.shape_cast %72 : vector<1x128x128xbf16> to vector<128x128xbf16>
    %cst_55 = arith.constant dense<0.000000e+00> : vector<16x128xf32>
    %74 = tpu.matmul %71, %73, %cst_55 {dimension_numbers = #tpu.dot_dimension_numbers<[1], [0], [0], [1], [0, 0, 1, 1], [], []>} : vector<16x128xbf16>, vector<128x128xbf16>, vector<16x128xf32> -> vector<16x128xf32>
    %75 = arith.addf %69, %74 : vector<16x128xf32>
    %c2_56 = arith.constant 2 : index
    %c0_57 = arith.constant 0 : index
    %76 = vector.load %arg10[%c2_56, %c0_57] : memref<18x128xf32, #tpu.memory_space<vmem>>, vector<16x128xf32>
    %77 = arith.truncf %76 : vector<16x128xf32> to vector<16x128xbf16>
    %c2_58 = arith.constant 2 : index
    %c0_59 = arith.constant 0 : index
    %c0_60 = arith.constant 0 : index
    %78 = vector.load %arg3[%c2_58, %c0_59, %c0_60] : memref<3x128x128xbf16, #tpu.memory_space<vmem>>, vector<1x128x128xbf16>
    %79 = vector.shape_cast %78 : vector<1x128x128xbf16> to vector<128x128xbf16>
    %cst_61 = arith.constant dense<0.000000e+00> : vector<16x128xf32>
    %80 = tpu.matmul %77, %79, %cst_61 {dimension_numbers = #tpu.dot_dimension_numbers<[1], [0], [0], [1], [0, 0, 1, 1], [], []>} : vector<16x128xbf16>, vector<128x128xbf16>, vector<16x128xf32> -> vector<16x128xf32>
    %81 = arith.addf %75, %80 : vector<16x128xf32>
    %c0_62 = arith.constant 0 : index
    %c0_63 = arith.constant 0 : index
    %82 = vector.load %arg6[%c0_62, %c0_63] : memref<1x128xf32, #tpu.memory_space<vmem>>, vector<1x128xf32>
    %c0_64 = arith.constant 0 : index
    %c0_65 = arith.constant 0 : index
    %83 = vector.load %arg7[%c0_64, %c0_65] : memref<1x128xf32, #tpu.memory_space<vmem>>, vector<1x128xf32>
    %84 = vector.shape_cast %81 : vector<16x128xf32> to vector<1x16x128xf32>
    %cst_66 = arith.constant dense<0.000000e+00> : vector<1xf32>
    %85 = vector.multi_reduction <add>, %84, %cst_66 [1, 2] : vector<1x16x128xf32> to vector<1xf32>
    %86 = vector.shape_cast %85 : vector<1xf32> to vector<1x1x1xf32>
    %87 = vector.extract %86[0, 0, 0] : f32 from vector<1x1x1xf32>
    %88 = arith.mulf %81, %81 : vector<16x128xf32>
    %89 = vector.shape_cast %88 : vector<16x128xf32> to vector<1x16x128xf32>
    %cst_67 = arith.constant dense<0.000000e+00> : vector<1xf32>
    %90 = vector.multi_reduction <add>, %89, %cst_67 [1, 2] : vector<1x16x128xf32> to vector<1xf32>
    %91 = vector.shape_cast %90 : vector<1xf32> to vector<1x1x1xf32>
    %92 = vector.extract %91[0, 0, 0] : f32 from vector<1x1x1xf32>
    %cst_68 = arith.constant 2.048000e+03 : f32
    %93 = arith.divf %87, %cst_68 : f32
    %cst_69 = arith.constant 2.048000e+03 : f32
    %94 = arith.divf %92, %cst_69 : f32
    %95 = arith.mulf %93, %93 : f32
    %96 = arith.subf %94, %95 : f32
    %cst_70 = arith.constant 9.99999974E-6 : f32
    %97 = arith.addf %96, %cst_70 : f32
    %98 = math.rsqrt %97 : f32
    %99 = vector.broadcast %93 : f32 to vector<16x128xf32>
    %100 = arith.subf %81, %99 : vector<16x128xf32>
    %101 = vector.broadcast %98 : f32 to vector<16x128xf32>
    %102 = arith.mulf %100, %101 : vector<16x128xf32>
    %103 = vector.broadcast %82 : vector<1x128xf32> to vector<16x128xf32>
    %104 = arith.mulf %102, %103 : vector<16x128xf32>
    %105 = vector.broadcast %83 : vector<1x128xf32> to vector<16x128xf32>
    %106 = arith.addf %104, %105 : vector<16x128xf32>
    %c0_71 = arith.constant 0 : index
    %c0_72 = arith.constant 0 : index
    %c0_73 = arith.constant 0 : index
    %107 = vector.load %arg8[%c0_71, %c0_72, %c0_73] : memref<1x16x128xf32, #tpu.memory_space<vmem>>, vector<1x16x128xf32>
    %108 = vector.shape_cast %107 : vector<1x16x128xf32> to vector<16x128xf32>
    %109 = vector.shape_cast %106 : vector<16x128xf32> to vector<1x16x128xf32>
    tpu.vector_store %arg8[%c0_71, %c0_72, %c0_73], %109 {strides = array<i32>} : memref<1x16x128xf32, #tpu.memory_space<vmem>>, vector<1x16x128xf32>,
    return
  }
  func.func @transform_0(%arg0: i32) -> (i32, i32, i32) {
    %c0_i32 = arith.constant 0 : i32
    %c0_i32_0 = arith.constant 0 : i32
    %c0_i32_1 = arith.constant 0 : i32
    return %arg0, %c0_i32, %c0_i32_0 : i32, i32, i32
  }
  func.func @transform_1(%arg0: i32) -> (i32, i32, i32) {
    %c0_i32 = arith.constant 0 : i32
    %c0_i32_0 = arith.constant 0 : i32
    %c0_i32_1 = arith.constant 0 : i32
    %c0_i32_2 = arith.constant 0 : i32
    return %c0_i32, %c0_i32_0, %c0_i32_1 : i32, i32, i32
  }
  func.func @transform_2(%arg0: i32) -> (i32, i32, i32) {
    %c0_i32 = arith.constant 0 : i32
    %c0_i32_0 = arith.constant 0 : i32
    %c0_i32_1 = arith.constant 0 : i32
    %c0_i32_2 = arith.constant 0 : i32
    return %c0_i32, %c0_i32_0, %c0_i32_1 : i32, i32, i32
  }
  func.func @transform_3(%arg0: i32) -> (i32, i32) {
    %c0_i32 = arith.constant 0 : i32
    %c0_i32_0 = arith.constant 0 : i32
    %c0_i32_1 = arith.constant 0 : i32
    return %c0_i32, %c0_i32_0 : i32, i32
  }
  func.func @transform_4(%arg0: i32) -> (i32, i32) {
    %c0_i32 = arith.constant 0 : i32
    %c0_i32_0 = arith.constant 0 : i32
    %c0_i32_1 = arith.constant 0 : i32
    return %c0_i32, %c0_i32_0 : i32, i32
  }
  func.func @transform_5(%arg0: i32) -> (i32, i32) {
    %c0_i32 = arith.constant 0 : i32
    %c0_i32_0 = arith.constant 0 : i32
    %c0_i32_1 = arith.constant 0 : i32
    return %c0_i32, %c0_i32_0 : i32, i32
  }
  func.func @transform_6(%arg0: i32) -> (i32, i32) {
    %c0_i32 = arith.constant 0 : i32
    %c0_i32_0 = arith.constant 0 : i32
    %c0_i32_1 = arith.constant 0 : i32
    return %c0_i32, %c0_i32_0 : i32, i32
  }
  func.func @transform_7(%arg0: i32) -> (i32, i32, i32) {
    %c0_i32 = arith.constant 0 : i32
    %c0_i32_0 = arith.constant 0 : i32
    %c0_i32_1 = arith.constant 0 : i32
    return %arg0, %c0_i32, %c0_i32_0 : i32, i32, i32
  }
}

</mosaic_0001>

<bundles_post_ra>
// kernel: tile.23
= control target key start
LH: loop header
LB: loop body
LE: loop exit
PB: predicated region body
PF: predicated region fallthrough
CT: control target
= control target key end

     0   :  { %s28_s0 = inlined_call_operand.vmem [shape: f32[8], index: 0, kind: input, shape index: {}]   ;;  %s29_s1 = inlined_call_operand.vmem [shape: f32[16,8], index: 1, kind: output, shape index: {}]  }
   0x1   :  { %v4_v0 = vld [vmem:[%s28_s0] ss:$0 sm:$0xff] }
   0x2   :  { %5 = vst [vmem:[%s29_s1] sm:$0xff] %v4_v0  ;;  %8 = vst [vmem:[%s29_s1 + $0x8] sm:$0xff] %v4_v0 }

// kernel: tile.24
= control target key start
LH: loop header
LB: loop body
LE: loop exit
PB: predicated region body
PF: predicated region fallthrough
CT: control target
= control target key end

     0   :  { %s131_s10 = smov 120   ;;  %s132_s11 = smov 104   ;;  %vm3_vm0 = vcmask 64512   ;;  %vm9_vm1 = vcmask 1048512   ;;  %vm15_vm2 = vcmask 982912   ;;  %vm21_vm3 = vcmask 917312   ;;  %s207_s0 = inlined_call_operand.vmem [shape: f32[16,8], index: 0, kind: input, shape index: {}]   ;;  %s208_s1 = inlined_call_operand.vmem [shape: f32[1,128], index: 1, kind: output, shape index: {}]  }
   0x1   :  { %v101_v0 = vld [vmem:[%s207_s0 + $0xf] sm:$0x1]   ;;  %v103_v1 = vld [vmem:[%s207_s0 + $0xd] sm:$0x1]   ;;  %v102_v2 = vld [vmem:[%s207_s0 + $0xe] sm:$0x1]  }
   0x2   :  { %7 = vrot.lane.b32.xlu0 %v101_v0, %s131_s10  ;;  %19 = vrot.lane.b32.xlu1 %v103_v1, %s132_s11  ;;  %v104_v3 = vld [vmem:[%s207_s0 + $0xc] sm:$0x1]   ;;  %s133_s16 = smov 112   ;;  %s134_s17 = smov 96   ;;  %v105_v4 = vld [vmem:[%s207_s0 + $0xb] sm:$0x1]  }
   0x3   :  { %v106_v5 = vld [vmem:[%s207_s0 + $0xa] sm:$0x1]   ;;  %v2_v6 = vld [vmem:[%s207_s0] sm:$0x1]   ;;  %s135_s24 = smov 88   ;;  %s136_s25 = smov 80  }
   0x4   :  { %4 = vst.msk [vmem:[#allocation0] sm:$0x1] %vm3_vm0, %v2_v6   ;;  %v107_v7 = vld [vmem:[%s207_s0 + $0x9] sm:$0x1]   ;;  %v108_v8 = vld [vmem:[%s207_s0 + $0x8] sm:$0x1]  }
   0x5   :  { %s137_s30 = smov 72   ;;  %s138_s2 = smov 64   ;;  %v109_v9 = vld [vmem:[%s207_s0 + $0x7] sm:$0x1]   ;;  %v110_v10 = vld [vmem:[%s207_s0 + $0x6] sm:$0x1]  }
   0x6   :  { %13 = vrot.lane.b32.xlu0 %v102_v2, %s133_s16  ;;  %25 = vrot.lane.b32.xlu1 %v104_v3, %s134_s17  ;;  %s139_s7 = smov 56   ;;  %s140_s8 = smov 48   ;;  %v111_v11 = vld [vmem:[%s207_s0 + $0x5] sm:$0x1]   ;;  %v112_v12 = vld [vmem:[%s207_s0 + $0x4] sm:$0x1]  }
   0x7   :  { %s141_s13 = smov 40   ;;  %s142_s14 = smov 32   ;;  %v113_v13 = vld [vmem:[%s207_s0 + $0x3] sm:$0x1]   ;;  %v114_v14 = vld [vmem:[%s207_s0 + $0x2] sm:$0x1]  }
   0x8   :  { %s143_s19 = smov 24   ;;  %s144_s20 = smov 16   ;;  %v115_v15 = vld [vmem:[%s207_s0 + $0x1] sm:$0x1]   ;;  %vm27_vm4 = vcmask 851712   ;;  %vm33_vm5 = vcmask 786112  }
   0x9   :  { %s145_s0 = smov 8   ;;  %vm39_vm6 = vcmask 720512   ;;  %vm45_vm7 = vcmask 654912   ;;  %vm51_vm8 = vcmask 589312   ;;  %vm57_vm9 = vcmask 523712  }
   0xa   :  { %31 = vrot.lane.b32.xlu0 %v105_v4, %s135_s24  ;;  %37 = vrot.lane.b32.xlu1 %v106_v5, %s136_s25  ;;  %vm63_vm10 = vcmask 458112   ;;  %vm69_vm11 = vcmask 392512   ;;  %vm75_vm12 = vcmask 326912   ;;  %vm81_vm13 = vcmask 261312  }
   0xb   :  { %vm87_vm14 = vcmask 195712   ;;  %vm93_vm15 = vcmask 130112  }
   0xe   :  { %43 = vrot.lane.b32.xlu0 %v107_v7, %s137_s30  ;;  %49 = vrot.lane.b32.xlu1 %v108_v8, %s138_s2 }
  0x12   :  { %55 = vrot.lane.b32.xlu0 %v109_v9, %s139_s7  ;;  %61 = vrot.lane.b32.xlu1 %v110_v10, %s140_s8 }
  0x16   :  { %67 = vrot.lane.b32.xlu0 %v111_v11, %s141_s13  ;;  %73 = vrot.lane.b32.xlu1 %v112_v12, %s142_s14 }
  0x1a   :  { %79 = vrot.lane.b32.xlu0 %v113_v13, %s143_s19  ;;  %85 = vrot.lane.b32.xlu1 %v114_v14, %s144_s20 }
  0x1e   :  { %91 = vrot.lane.b32.xlu0 %v115_v15, %s145_s0 }
  0x74   :  { %v8_v16 = vpop.permute.xlu0 %7   ;;  %v20_v17 = vpop.permute.xlu1 %19  }
  0x75   :  { %10 = vst.msk [vmem:[#allocation0] sm:$0x1] %vm9_vm1, %v8_v16  }
  0x78   :  { %v14_v18 = vpop.permute.xlu0 %13   ;;  %v26_v19 = vpop.permute.xlu1 %25  }
  0x79   :  { %16 = vst.msk [vmem:[#allocation0] sm:$0x1] %vm15_vm2, %v14_v18  }
  0x7a   :  { %22 = vst.msk [vmem:[#allocation0] sm:$0x1] %vm21_vm3, %v20_v17  }
  0x7b   :  { %28 = vst.msk [vmem:[#allocation0] sm:$0x1] %vm27_vm4, %v26_v19  }
  0x7c   :  { %v32_v20 = vpop.permute.xlu0 %31   ;;  %v38_v21 = vpop.permute.xlu1 %37  }
  0x7d   :  { %34 = vst.msk [vmem:[#allocation0] sm:$0x1] %vm33_vm5, %v32_v20  }
  0x7e   :  { %40 = vst.msk [vmem:[#allocation0] sm:$0x1] %vm39_vm6, %v38_v21  }
  0x80   :  { %v44_v22 = vpop.permute.xlu0 %43   ;;  %v50_v23 = vpop.permute.xlu1 %49  }
  0x81   :  { %46 = vst.msk [vmem:[#allocation0] sm:$0x1] %vm45_vm7, %v44_v22  }
  0x82   :  { %52 = vst.msk [vmem:[#allocation0] sm:$0x1] %vm51_vm8, %v50_v23  }
  0x84   :  { %v56_v24 = vpop.permute.xlu0 %55   ;;  %v62_v25 = vpop.permute.xlu1 %61  }
  0x85   :  { %58 = vst.msk [vmem:[#allocation0] sm:$0x1] %vm57_vm9, %v56_v24  }
  0x86   :  { %64 = vst.msk [vmem:[#allocation0] sm:$0x1] %vm63_vm10, %v62_v25  }
  0x88   :  { %v68_v26 = vpop.permute.xlu0 %67   ;;  %v74_v27 = vpop.permute.xlu1 %73  }
  0x89   :  { %70 = vst.msk [vmem:[#allocation0] sm:$0x1] %vm69_vm11, %v68_v26  }
  0x8a   :  { %76 = vst.msk [vmem:[#allocation0] sm:$0x1] %vm75_vm12, %v74_v27  }
  0x8c   :  { %v80_v28 = vpop.permute.xlu0 %79   ;;  %v86_v29 = vpop.permute.xlu1 %85  }
  0x8d   :  { %82 = vst.msk [vmem:[#allocation0] sm:$0x1] %vm81_vm13, %v80_v28  }
  0x8e   :  { %88 = vst.msk [vmem:[#allocation0] sm:$0x1] %vm87_vm14, %v86_v29  }
  0x90   :  { %v92_v30 = vpop.permute.xlu0 %91  }
  0x91   :  { %94 = vst.msk [vmem:[#allocation0] sm:$0x1] %vm93_vm15, %v92_v30  }
  0x98   :  { %v98_v31 = vld [vmem:[#allocation0] sm:$0x1] }
  0x99   :  { %100 = vst [vmem:[%s208_s1] sm:$0x1] %v98_v31 }

// kernel: double_conv.1
= control target key start
LH: loop header
LB: loop body
LE: loop exit
PB: predicated region body
PF: predicated region fallthrough
CT: control target
= control target key end

     0   :  { %s1417_s24 = smov 0   ;;  %s1630_s0 = inlined_call_operand.vmem [shape: f32[2,16,64], index: 0, kind: input, shape index: {}]   ;;  %s1631_s1 = inlined_call_operand.vmem [shape: bf16[3,64,128], index: 1, kind: input, shape index: {}]   ;;  %s1632_s2 = inlined_call_operand.vmem [shape: bf16[3,128,128], index: 2, kind: input, shape index: {}]   ;;  %s1633_s3 = inlined_call_operand.vmem [shape: f32[1,128], index: 3, kind: input, shape index: {}]   ;;  %s1634_s4 = inlined_call_operand.vmem [shape: f32[1,128], index: 4, kind: input, shape index: {}]   ;;  %s1635_s5 = inlined_call_operand.vmem [shape: f32[1,128], index: 5, kind: input, shape index: {}]   ;;  %s1636_s6 = inlined_call_operand.vmem [shape: f32[1,128], index: 6, kind: input, shape index: {}]   ;;  %s1637_s7 = inlined_call_operand.vmem [shape: f32[2,16,128], index: 7, kind: output, shape index: {}]  }
   0x1 LB: > { %s1045_s25 = sadd.s32 4294967295, %s1373_s24   ;;  %p1049_p0 = scmp.ge.s32.totalorder %s1373_s24, 1  ;;  %s1373_s24 = sphi %s1417_s24, %s17_s24  }
   0x2   : > { %p237_p1 = scmp.lt.s32.totalorder %s1373_s24, 3 }
   0x4   : > { %p238_p2 = pnand %p1049_p0, %p237_p1 }
   0x5   : > { %v1323_v0 = vld [vmem:[%s1631_s1 + $0x20] sm:$0xff] (!%p238_p2)   ;;  %v1375_v1 = vmov (!%p238_p2), 0.0   ;;  %v1324_v2 = vld [vmem:[%s1631_s1 + $0x28] sm:$0xff] (!%p238_p2)   ;;  %vm1376_vm0 = vmmov (!%p238_p2), 0   ;;  %p269_p3 = scmp.lt.s32.totalorder (!%p238_p2), %s1045_s25, 1  ;;  %v1325_v3 = vld [vmem:[%s1631_s1 + $0x30] sm:$0xff] (!%p238_p2)  }
   0x6   : > { %241 = sbr.rel (%p238_p2) target bundleno = 1120 (0x460), region = 48  ;;  %1191 = vmatprep.subr.bf16.mxu0 (!%p238_p2), %v1375_v1  ;;  %598 = vst [vmem:[#allocation3] sm:$0x1] (!%p238_p2), %v1375_v1  ;;  %599 = vst [vmem:[#allocation3 + $0x11] sm:$0x1] (!%p238_p2), %v1375_v1  ;;  %1247 = vmatprep.subr.bf16.mxu1 (!%p238_p2), %v1375_v1  ;;  %vm282_vm1 = vcmask (!%p238_p2), 516096  }
   0x7   : > { %1192 = vmatpush3.bf16.msra.mxu0 (!%p238_p2), %v1323_v0  ;;  %1199 = vmatprep.mubr.msk.bf16.mxu0 (!%p238_p2), %vm1376_vm0, %v1375_v1  ;;  %vm285_vm2 = vcmask (!%p238_p2), 523264   ;;  %283 = vst.msk [vmem:[#allocation2] sm:$0x1] (!%p238_p2), %vm282_vm1, %v1375_v1  ;;  %284 = vst.msk [vmem:[#allocation2 + $0x11] sm:$0x1] (!%p238_p2), %vm282_vm1, %v1375_v1  ;;  %v1326_v6 = vld [vmem:[%s1631_s1 + $0x38] sm:$0xff] (!%p238_p2)  }
   0x8   : > { %1193 = vmatprep.subr.bf16.mxu0 (!%p238_p2), %v1375_v1  ;;  %1263 = vmatprep.mubr.msk.bf16.mxu1 (!%p238_p2), %vm1376_vm0, %v1375_v1  ;;  %v1327_v9 = vld [vmem:[%s1631_s1] sm:$0xff] (!%p238_p2)   ;;  %v1328_v11 = vld [vmem:[%s1631_s1 + $0x8] sm:$0xff] (!%p238_p2)   ;;  %v1329_v12 = vld [vmem:[%s1631_s1 + $0x10] sm:$0xff] (!%p238_p2)  }
   0x9   : > { %v1330_v13 = vld [vmem:[%s1631_s1 + $0x18] sm:$0xff] (!%p238_p2)   ;;  %v1331_v17 = vld [vmem:[%s1631_s1 + $0x40] sm:$0xff] (!%p238_p2)   ;;  %v1332_v18 = vld [vmem:[%s1631_s1 + $0x48] sm:$0xff] (!%p238_p2)  }
   0xa   : > { %v1333_v19 = vld [vmem:[%s1631_s1 + $0x50] sm:$0xff] (!%p238_p2)   ;;  %v1334_v20 = vld [vmem:[%s1631_s1 + $0x58] sm:$0xff] (!%p238_p2)   ;;  %v1336_v34 = vld [vmem:[%s1632_s2 + $0x40] sm:$0xff] (!%p238_p2)  }
   0xb   : > { %1194 = vmatpush3.bf16.msra.mxu0 (!%p238_p2), %v1324_v2  ;;  %v1338_v39 = vld [vmem:[%s1632_s2 + $0x48] sm:$0xff] (!%p238_p2)   ;;  %v1335_v42 = vld [vmem:[%s1632_s2] sm:$0xff] (!%p238_p2)   ;;  %v1340_v45 = vld [vmem:[%s1632_s2 + $0x50] sm:$0xff] (!%p238_p2)  }
   0xc   : > { %1195 = vmatprep.subr.bf16.mxu0 (!%p238_p2), %v1375_v1  ;;  %1248 = vmatpush3.bf16.msra.mxu1 (!%p238_p2), %v1335_v42  ;;  %v1337_v48 = vld [vmem:[%s1632_s2 + $0x8] sm:$0xff] (!%p238_p2)   ;;  %v1342_v50 = vld [vmem:[%s1632_s2 + $0x58] sm:$0xff] (!%p238_p2)   ;;  %v1339_v52 = vld [vmem:[%s1632_s2 + $0x10] sm:$0xff] (!%p238_p2)  }
   0xd   : > { %s1639_s25 = smov (!%p269_p3, %s1045_s25), 1  ;;  %1249 = vmatprep.subr.bf16.mxu1 %v1375_v1  ;;  %v1344_v53 = vld [vmem:[%s1632_s2 + $0x60] sm:$0xff]   ;;  %v1341_v54 = vld [vmem:[%s1632_s2 + $0x18] sm:$0xff]   ;;  %v1346_v55 = vld [vmem:[%s1632_s2 + $0x68] sm:$0xff]  }
   0xe   : > { %s1147_s9 = sshll.u32 %s1639_s25, 4  ;;  %v1343_v56 = vld [vmem:[%s1632_s2 + $0x20] sm:$0xff]   ;;  %v1348_v57 = vld [vmem:[%s1632_s2 + $0x70] sm:$0xff]   ;;  %v1345_v58 = vld [vmem:[%s1632_s2 + $0x28] sm:$0xff]  }
   0xf   : > { %s273_s12 = scalar_lea.vmem %s1630_s0, %s1147_s9  ;;  %1196 = vmatpush3.bf16.msra.mxu0 %v1325_v3  ;;  %v1350_v59 = vld [vmem:[%s1632_s2 + $0x78] sm:$0xff]   ;;  %v1347_v60 = vld [vmem:[%s1632_s2 + $0x30] sm:$0xff]  }
  0x10   : > { %v280_v4 = vld [vmem:[%s273_s12] sm:$0xff]  ;;  %v281_v5 = vld [vmem:[%s273_s12 + $0x8] sm:$0xff]  ;;  %1197 = vmatprep.subr.bf16.mxu0 %v1375_v1  ;;  %1250 = vmatpush3.bf16.msra.mxu1 %v1337_v48  ;;  %v1349_v61 = vld [vmem:[%s1632_s2 + $0x38] sm:$0xff]  }
  0x11   : > { %286 = vst.msk [vmem:[#allocation2 + $0x1] sm:$0xff] %vm285_vm2, %v280_v4  ;;  %287 = vst.msk [vmem:[#allocation2 + $0x9] sm:$0xff] %vm285_vm2, %v281_v5  ;;  %1251 = vmatprep.subr.bf16.mxu1 %v1375_v1  ;;  %v1085_v4 = vld [vmem:[%s1633_s3] ss:$0 sm:$0xff] }
  0x13   : > { %1198 = vmatpush3.bf16.msra.mxu0 %v1326_v6 }
  0x14   : > { %1203 = vmatprep.subr.bf16.mxu0 %v1375_v1  ;;  %1252 = vmatpush3.bf16.msra.mxu1 %v1339_v52 }
  0x15   : > { %1253 = vmatprep.subr.bf16.mxu1 %v1375_v1 }
  0x18   : > { %v299_v7 = vld [vmem:[#allocation2 + $0x1] sm:$0xff]  ;;  %v300_v8 = vld [vmem:[#allocation2 + $0x9] sm:$0xff]  ;;  %1254 = vmatpush3.bf16.msra.mxu1 %v1341_v54 }
  0x19   : > { %v301_v10 = vpack.c.bf16 %v300_v8, %v299_v7  ;;  %v288_v14 = vld [vmem:[#allocation2] sm:$0xff]  ;;  %v289_v15 = vld [vmem:[#allocation2 + $0x8] sm:$0xff]  ;;  %1255 = vmatprep.subr.bf16.mxu1 %v1375_v1 }
  0x1a   : > { %v290_v16 = vpack.c.bf16 %v289_v15, %v288_v14  ;;  %v447_v21 = vld [vmem:[#allocation2 + $0x2] sm:$0xff]  ;;  %v448_v22 = vld [vmem:[#allocation2 + $0xa] sm:$0xff]  ;;  %v1086_v8 = vld [vmem:[%s1634_s4] ss:$0 sm:$0xff] }
  0x1b   : > { %1200 = vmatmul.mubr.msk.bf16.vlgmr.msra.gmra.mrb[0].mxu0 %vm285_vm2, %v301_v10  ;;  %v449_v23 = vpack.c.bf16 %v448_v22, %v447_v21 }
  0x1c   : > { %1204 = vmatpush3.bf16.msra.mxu0 %v1327_v9  ;;  %1211 = vmatprep.mubr.msk.bf16.mxu0 %vm1376_vm0, %v1375_v1 }
  0x1d   : > { %1205 = vmatprep.subr.bf16.mxu0 %v1375_v1  ;;  %1256 = vmatpush3.bf16.msra.mxu1 %v1343_v56 }
  0x1e   : > { %1257 = vmatprep.subr.bf16.mxu1 %v1375_v1 }
  0x20   : > { %1206 = vmatpush3.bf16.msra.mxu0 %v1328_v11 }
  0x21   : > { %1207 = vmatprep.subr.bf16.mxu0 %v1375_v1  ;;  %1258 = vmatpush3.bf16.msra.mxu1 %v1345_v58 }
  0x22   : > { %1259 = vmatprep.subr.bf16.mxu1 %v1375_v1 }
  0x24   : > { %1208 = vmatpush3.bf16.msra.mxu0 %v1329_v12 }
  0x25   : > { %1209 = vmatprep.subr.bf16.mxu0 %v1375_v1  ;;  %1260 = vmatpush3.bf16.msra.mxu1 %v1347_v60 }
  0x26   : > { %1261 = vmatprep.subr.bf16.mxu1 %v1375_v1 }
  0x28   : > { %1210 = vmatpush3.bf16.msra.mxu0 %v1330_v13 }
  0x29   : > { %1215 = vmatprep.subr.bf16.mxu0 %v1375_v1  ;;  %1262 = vmatpush3.bf16.msra.mxu1 %v1349_v61 }
  0x2a   : > { %1267 = vmatprep.subr.bf16.mxu1 %v1375_v1 }
  0x2b   : > { %1212 = vmatmul.mubr.msk.bf16.vlgmr.msra.gmra.mrb[0].mxu0 %vm285_vm2, %v290_v16 }
  0x2c   : > { %1216 = vmatpush3.bf16.msra.mxu0 %v1331_v17  ;;  %1223 = vmatprep.mubr.msk.bf16.mxu0 %vm1376_vm0, %v1375_v1 }
  0x2d   : > { %1217 = vmatprep.subr.bf16.mxu0 %v1375_v1 }
  0x30   : > { %1218 = vmatpush3.bf16.msra.mxu0 %v1332_v18 }
  0x31   : > { %1219 = vmatprep.subr.bf16.mxu0 %v1375_v1 }
  0x34   : > { %1220 = vmatpush3.bf16.msra.mxu0 %v1333_v19 }
  0x35   : > { %1221 = vmatprep.subr.bf16.mxu0 %v1375_v1 }
  0x38   : > { %1222 = vmatpush3.bf16.msra.mxu0 %v1334_v20 }
  0x39   : > { %1227 = vmatprep.subr.bf16.mxu0 %v1375_v1 }
  0x3b   : > { %1224 = vmatmul.mubr.msk.bf16.vlgmr.msra.gmra.mrb[0].mxu0 %vm285_vm2, %v449_v23 }
  0x3c   : > { %1243 = vmatprep.mubr.msk.bf16.mxu0 %vm1376_vm0, %v1375_v1  ;;  %1228 = vmatpush3.bf16.msra.mxu0 %v1336_v34  ;;  %v1358_v34 = vld [vmem:[%s1632_s2 + $0xb8] sm:$0xff]  }
  0x3d   : > { %1229 = vmatprep.subr.bf16.mxu0 %v1375_v1 }
  0x40   : > { %1230 = vmatpush3.bf16.msra.mxu0 %v1338_v39 }
  0x41   : > { %1231 = vmatprep.subr.bf16.mxu0 %v1375_v1 }
  0x44   : > { %1232 = vmatpush3.bf16.msra.mxu0 %v1340_v45 }
  0x45   : > { %1233 = vmatprep.subr.bf16.mxu0 %v1375_v1 }
  0x48   : > { %1234 = vmatpush3.bf16.msra.mxu0 %v1342_v50 }
  0x49   : > { %1235 = vmatprep.subr.bf16.mxu0 %v1375_v1 }
  0x4c   : > { %1236 = vmatpush3.bf16.msra.mxu0 %v1344_v53 }
  0x4d   : > { %1237 = vmatprep.subr.bf16.mxu0 %v1375_v1 }
  0x50   : > { %1238 = vmatpush3.bf16.msra.mxu0 %v1346_v55 }
  0x51   : > { %1239 = vmatprep.subr.bf16.mxu0 %v1375_v1 }
  0x54   : > { %1240 = vmatpush3.bf16.msra.mxu0 %v1348_v57 }
  0x55   : > { %1241 = vmatprep.subr.bf16.mxu0 %v1375_v1 }
  0x58   : > { %1242 = vmatpush3.bf16.msra.mxu0 %v1350_v59 }
 0x10e   : > { %v1502_v24 = vpop.f32.mrb[0].mxu0 }
 0x10f   : > { %v1225_v25 = vpop.f32.mrb[1].mxu0  ;;  %v541_v29 = vmul.f32 %v1502_v24, %v1502_v24 }
 0x110   : > { %v1504_v26 = vpop.f32.mrb[2].mxu0 }
 0x111   : > { %v1226_v27 = vpop.f32.mrb[3].mxu0  ;;  %v531_v28 = vadd.f32 %v1504_v26, %v1502_v24  ;;  %v542_v30 = vmul.f32 %v1504_v26, %v1504_v26 }
 0x113   : > { %532 = vadd.xlane.f32.xlu0 %v531_v28  ;;  %v543_v31 = vadd.f32 %v542_v30, %v541_v29  ;;  %v1352_v28 = vld [vmem:[%s1632_s2 + $0x88] sm:$0xff]   ;;  %v1353_v29 = vld [vmem:[%s1632_s2 + $0x90] sm:$0xff]   ;;  %v1354_v30 = vld [vmem:[%s1632_s2 + $0x98] sm:$0xff]  }
 0x117   : > { %544 = vadd.xlane.f32.xlu0 %v543_v31  ;;  %v1355_v31 = vld [vmem:[%s1632_s2 + $0xa0] sm:$0xff]  }
 0x1a0   : > { %v533_v32 = vpop.xlane.xlu0 %532 }
 0x1a1   : > { %v534_v33 = vrot.slane %v533_v32, 4 }
 0x1a3   : > { %v535_v35 = vadd.f32 %v534_v33, %v533_v32  ;;  %v1356_v32 = vld [vmem:[%s1632_s2 + $0xa8] sm:$0xff]   ;;  %v1357_v33 = vld [vmem:[%s1632_s2 + $0xb0] sm:$0xff]  }
 0x1a4   : > { %v545_v36 = vpop.xlane.xlu0 %544 }
 0x1a5   : > { %v536_v37 = vrot.slane %v535_v35, 2  ;;  %v546_v38 = vrot.slane %v545_v36, 4 }
 0x1a7   : > { %v547_v40 = vadd.f32 %v546_v38, %v545_v36  ;;  %v537_v41 = vadd.f32 %v536_v37, %v535_v35 }
 0x1a9   : > { %v548_v43 = vrot.slane %v547_v40, 2  ;;  %v538_v44 = vrot.slane %v537_v41, 1 }
 0x1ab   : > { %v549_v46 = vadd.f32 %v548_v43, %v547_v40  ;;  %v539_v47 = vadd.f32 %v538_v44, %v537_v41 }
 0x1ad   : > { %1301 = vpush %v539_v47  ;;  %v550_v49 = vrot.slane %v549_v46, 1 }
 0x1af   : > { %v551_v51 = vadd.f32 %v550_v49, %v549_v46 }
 0x1b1   : > { %1303 = vpush %v551_v51 }
 0x1de   : > { %s1302_s23 = spop %1301 }
 0x1df   : > { %s555_s26 = smul.f32 0.00048828125, %s1302_s23 }
 0x1e1   : > { %v565_v62 = vstv %s555_s26  ;;  %s559_s27 = smul.f32 %s555_s26, %s555_s26 }
 0x1e2   : > { %s1304_s28 = spop %1303  ;;  %v566_v63 = vsub.f32 %v1502_v24, %v565_v62  ;;  %v567_v0 = vsub.f32 %v1504_v26, %v565_v62  ;;  %v1351_v26 = vld [vmem:[%s1632_s2 + $0x80] sm:$0xff]  }
 0x1e3   : > { %s558_s29 = smul.f32 0.00048828125, %s1304_s28 }
 0x1e5   : > { %s560_s30 = ssub.f32 %s558_s29, %s559_s27  ;;  %s278_s27 = scalar_lea.vmem %s1637_s7, %s1147_s9 }
 0x1e7   : > { %s561_s8 = sadd.f32 1e-05, %s560_s30 }
 0x1e9   : > { %v562_v2 = vstv %s561_s8 }
 0x1ea   : > { %1359 = vrsqrt.f32 %v562_v2 }
 0x1f4   : > { %v1360_v3 = vpop.eup %1359 }
 0x1f5   : > { %1305 = vpush %v1360_v3 }
 0x226   : > { %s1306_s10 = spop %1305 }
 0x227   : > { %v568_v5 = vstv %s1306_s10 }
 0x228   : > { %v569_v6 = vmul.f32 %v568_v5, %v566_v63  ;;  %v570_v7 = vmul.f32 %v568_v5, %v567_v0 }
 0x22a   : > { %v577_v9 = vmul.f32 %v1085_v4, %v569_v6  ;;  %v578_v10 = vmul.f32 %v1085_v4, %v570_v7  ;;  %v1143_v7 = vld [vmem:[%s1635_s5] ss:$0 sm:$0xff] }
 0x22c   : > { %v585_v11 = vadd.f32 %v1086_v8, %v577_v9  ;;  %v586_v12 = vadd.f32 %v1086_v8, %v578_v10 }
 0x22e   : > { %v590_v13 = vmul.f32 0.70710677, %v585_v11  ;;  %v591_v14 = vmul.f32 0.70710677, %v586_v12  ;;  %v587_v17 = vmul.f32 0.5, %v585_v11  ;;  %v588_v19 = vmul.f32 0.5, %v586_v12 }
 0x22f   : > { %v1144_v11 = vld [vmem:[%s1636_s6] ss:$0 sm:$0xff] }
 0x230   : > { %1361 = verf.f32 %v590_v13 }
 0x231   : > { %1363 = verf.f32 %v591_v14 }
 0x23a   : > { %v1362_v15 = vpop.eup %1361 }
 0x23b   : > { %v1364_v16 = vpop.eup %1363  ;;  %v594_v18 = vadd.f32 1.0, %v1362_v15 }
 0x23c   : > { %v595_v20 = vadd.f32 1.0, %v1364_v16 }
 0x23d   : > { %v596_v21 = vmul.f32 %v594_v18, %v587_v17 }
 0x23e   : > { %v597_v22 = vmul.f32 %v595_v20, %v588_v19 }
 0x23f   : > { %600 = vst [vmem:[#allocation3 + $0x1] sm:$0xff] %v596_v21 }
 0x240   : > { %601 = vst [vmem:[#allocation3 + $0x9] sm:$0xff] %v597_v22  ;;  %v623_v23 = vpack.c.bf16 %v597_v22, %v596_v21 }
 0x242   : > { %1244 = vmatmul.mubr.bf16.vlgmr.msra.gmra.mrb[4].mxu0 %v623_v23 }
 0x246   : > { %v602_v24 = vld [vmem:[#allocation3] sm:$0xff] }
 0x247   : > { %v603_v25 = vld [vmem:[#allocation3 + $0x8] sm:$0xff] }
 0x248   : > { %v604_v27 = vpack.c.bf16 %v603_v25, %v602_v24  ;;  %v819_v35 = vld [vmem:[#allocation3 + $0x2] sm:$0xff]  ;;  %v820_v36 = vld [vmem:[#allocation3 + $0xa] sm:$0xff] }
 0x249   : > { %v821_v37 = vpack.c.bf16 %v820_v36, %v819_v35 }
 0x24a   : > { %1264 = vmatmul.mubr.bf16.vlgmr.msra.gmra.mrb[0].mxu1 %v604_v27 }
 0x24b   : > { %1268 = vmatpush3.bf16.msra.mxu1 %v1351_v26  ;;  %1283 = vmatprep.mubr.msk.bf16.mxu1 %vm1376_vm0, %v1375_v1 }
 0x24c   : > { %1269 = vmatprep.subr.bf16.mxu1 %v1375_v1 }
 0x24f   : > { %1270 = vmatpush3.bf16.msra.mxu1 %v1352_v28 }
 0x250   : > { %1271 = vmatprep.subr.bf16.mxu1 %v1375_v1 }
 0x253   : > { %1272 = vmatpush3.bf16.msra.mxu1 %v1353_v29 }
 0x254   : > { %1273 = vmatprep.subr.bf16.mxu1 %v1375_v1 }
 0x257   : > { %1274 = vmatpush3.bf16.msra.mxu1 %v1354_v30 }
 0x258   : > { %1275 = vmatprep.subr.bf16.mxu1 %v1375_v1 }
 0x25b   : > { %1276 = vmatpush3.bf16.msra.mxu1 %v1355_v31 }
 0x25c   : > { %1277 = vmatprep.subr.bf16.mxu1 %v1375_v1 }
 0x25f   : > { %1278 = vmatpush3.bf16.msra.mxu1 %v1356_v32 }
 0x260   : > { %1279 = vmatprep.subr.bf16.mxu1 %v1375_v1 }
 0x263   : > { %1280 = vmatpush3.bf16.msra.mxu1 %v1357_v33 }
 0x264   : > { %1281 = vmatprep.subr.bf16.mxu1 %v1375_v1 }
 0x267   : > { %1282 = vmatpush3.bf16.msra.mxu1 %v1358_v34 }
 0x26a   : > { %1284 = vmatmul.mubr.bf16.vlgmr.msra.gmra.mrb[0].mxu1 %v821_v37 }
 0x315   : > { %v723_v38 = vpop.f32.mrb[4].mxu0 }
 0x316   : > { %v1245_v39 = vpop.f32.mrb[5].mxu0 }
 0x317   : > { %v726_v40 = vpop.f32.mrb[6].mxu0 }
 0x318   : > { %v1246_v41 = vpop.f32.mrb[7].mxu0 }
 0x33d   : > { %v921_v42 = vpop.f32.mrb[0].mxu1 }
 0x33e   : > { %v1287_v43 = vadd.f32 %v921_v42, %v723_v38  ;;  %v1285_v44 = vpop.f32.mrb[1].mxu1 }
 0x33f   : > { %v924_v45 = vpop.f32.mrb[2].mxu1 }
 0x340   : > { %v1288_v46 = vadd.f32 %v924_v45, %v726_v40  ;;  %v1286_v47 = vpop.f32.mrb[3].mxu1  ;;  %v942_v50 = vmul.f32 %v1287_v43, %v1287_v43 }
 0x342   : > { %v932_v48 = vadd.f32 %v1288_v46, %v1287_v43  ;;  %v943_v49 = vmul.f32 %v1288_v46, %v1288_v46 }
 0x344   : > { %933 = vadd.xlane.f32.xlu1 %v932_v48  ;;  %v944_v1 = vadd.f32 %v943_v49, %v942_v50 }
 0x348   : > { %945 = vadd.xlane.f32.xlu1 %v944_v1 }
 0x3d1   : > { %v934_v51 = vpop.xlane.xlu1 %933 }
 0x3d2   : > { %v935_v52 = vrot.slane %v934_v51, 4 }
 0x3d4   : > { %v936_v53 = vadd.f32 %v935_v52, %v934_v51 }
 0x3d5   : > { %v946_v54 = vpop.xlane.xlu1 %945 }
 0x3d6   : > { %v937_v55 = vrot.slane %v936_v53, 2  ;;  %v947_v56 = vrot.slane %v946_v54, 4 }
 0x3d8   : > { %v948_v57 = vadd.f32 %v947_v56, %v946_v54  ;;  %v938_v58 = vadd.f32 %v937_v55, %v936_v53 }
 0x3da   : > { %v949_v59 = vrot.slane %v948_v57, 2  ;;  %v939_v60 = vrot.slane %v938_v58, 1 }
 0x3dc   : > { %v950_v61 = vadd.f32 %v949_v59, %v948_v57  ;;  %v940_v62 = vadd.f32 %v939_v60, %v938_v58 }
 0x3de   : > { %1307 = vpush %v940_v62  ;;  %v951_v63 = vrot.slane %v950_v61, 1 }
 0x3e0   : > { %v952_v0 = vadd.f32 %v951_v63, %v950_v61 }
 0x3e2   : > { %1309 = vpush %v952_v0 }
 0x40f   : > { %s1308_s11 = spop %1307 }
 0x410   : > { %s956_s12 = smul.f32 0.00048828125, %s1308_s11 }
 0x412   : > { %s960_s13 = smul.f32 %s956_s12, %s956_s12  ;;  %v966_v4 = vstv %s956_s12 }
 0x413   : > { %s1310_s14 = spop %1309  ;;  %v967_v5 = vsub.f32 %v1287_v43, %v966_v4  ;;  %v968_v6 = vsub.f32 %v1288_v46, %v966_v4 }
 0x414   : > { %s959_s15 = smul.f32 0.00048828125, %s1310_s14 }
 0x416   : > { %s961_s16 = ssub.f32 %s959_s15, %s960_s13 }
 0x418   : > { %s962_s17 = sadd.f32 1e-05, %s961_s16 }
 0x41a   : > { %v963_v2 = vstv %s962_s17 }
 0x41b   : > { %1365 = vrsqrt.f32 %v963_v2 }
 0x425   : > { %v1366_v3 = vpop.eup %1365 }
 0x426   : > { %1311 = vpush %v1366_v3 }
 0x457   : > { %s1312_s18 = spop %1311 }
 0x458   : > { %v969_v8 = vstv %s1312_s18 }
 0x459   : > { %v970_v9 = vmul.f32 %v969_v8, %v967_v5  ;;  %v971_v10 = vmul.f32 %v969_v8, %v968_v6 }
 0x45b   : > { %v978_v12 = vmul.f32 %v1143_v7, %v970_v9  ;;  %v979_v13 = vmul.f32 %v1143_v7, %v971_v10 }
 0x45d   : > { %v986_v14 = vadd.f32 %v1144_v11, %v978_v12  ;;  %v987_v15 = vadd.f32 %v1144_v11, %v979_v13 }
 0x45f   : > { %988 = vst [vmem:[%s278_s27] sm:$0xff] %v986_v14  ;;  %989 = vst [vmem:[%s278_s27 + $0x8] sm:$0xff] %v987_v15 }
 0x460 PF: > { %s17_s24 = sadd.s32 1, %s1373_s24  }
 0x461   : > { %p14_p4 = scmp.ge.s32.totalorder %s17_s24, 4  }
 0x463   :  { %16 = sbr.rel (!%p14_p4) target bundleno = 1 (0x1), region = 82 }

</bundles_post_ra>
